<compile_context>
chip_gen: v7x
topology: tpu7x:2x2x1
jax: 0.10.0
libtpu: 0.0.40
codegen_flags: <defaults>
</compile_context>

<pallas_src>
import jax
import jax.numpy as jnp
from jax.experimental import pallas as pl
from jax.experimental.pallas import tpu as pltpu

HID1 = 256
HID2 = 128


def _cdiv(a, b):
    return (a + b - 1) // b


def _round_up(n, m):
    return _cdiv(n, m) * m


def dqn_kernel(x_ref, w1_ref, b1_ref, w2_ref, b2_ref, w3_ref, b3_ref, out_ref):
    # Fused 3-layer MLP on one (TM, state_size) batch tile.
    # Raw f32 x tile is cast to bf16 here (no wrapper pad/cast pass); bf16
    # operands feed the MXU with f32 accumulation; bias-add + ReLU stay f32
    # on the VPU.
    x = x_ref[...].astype(jnp.bfloat16)                                  # (TM, S)
    h1 = jnp.dot(x, w1_ref[...], preferred_element_type=jnp.float32) + b1_ref[...]
    h1 = jnp.maximum(h1, 0.0).astype(jnp.bfloat16)                       # (TM, 256)
    h2 = jnp.dot(h1, w2_ref[...], preferred_element_type=jnp.float32) + b2_ref[...]
    h2 = jnp.maximum(h2, 0.0).astype(jnp.bfloat16)                       # (TM, 128)
    out = jnp.dot(h2, w3_ref[...], preferred_element_type=jnp.float32) + b3_ref[...]
    out_ref[...] = out.astype(out_ref.dtype)                             # (TM, A)


def _choose_tile(batch, tm_max):
    """Batch-tile size: multiple of 16 (bf16 sublane packing), >=2 grid steps
    whenever batch allows (so both v7x TensorCores get work), and <16 rows of
    padding waste per tile."""
    min_tiles = 2 if batch > 16 else 1
    n_tiles = max(min_tiles, _cdiv(batch, tm_max))
    tm = min(tm_max, _round_up(_cdiv(batch, n_tiles), 16))
    grid = _cdiv(batch, tm)
    return tm, grid


def dqn_forward(x, packed_params, action_size, *, tm_max=2048):
    """x: (batch, state_size) float32 -> (batch, action_size) float32 Q-values."""
    w1, b1, w2, b2, w3, b3 = packed_params
    batch, state_size = x.shape
    assert w1.shape == (state_size, HID1)
    assert w3.shape == (HID2, action_size)

    tm, grid = _choose_tile(batch, tm_max)
    padded_batch = grid * tm
    if padded_batch != batch:
        # Row-only pad (<16 junk rows per tile by construction); columns stay
        # at the raw state_size so there is no inflated copy of x anymore.
        # Junk rows produce junk Q-rows which the final [:batch] slice drops;
        # nothing inside the kernel reduces across the batch axis.
        x = jnp.pad(x, ((0, padded_batch - batch), (0, 0)))

    const = lambda i: (0, 0)  # weights/biases: same block every step -> VMEM-resident

    out = pl.pallas_call(
        dqn_kernel,
        out_shape=jax.ShapeDtypeStruct((padded_batch, action_size), jnp.float32),
        grid_spec=pltpu.PrefetchScalarGridSpec(
            num_scalar_prefetch=0,
            grid=(grid,),
            in_specs=[
                pl.BlockSpec((tm, state_size), lambda i: (i, 0)),  # x tile (pipelined)
                pl.BlockSpec((state_size, HID1), const),           # W1 (resident, unpadded K)
                pl.BlockSpec((1, HID1), const),                    # b1
                pl.BlockSpec((HID1, HID2), const),                 # W2
                pl.BlockSpec((1, HID2), const),                    # b2
                pl.BlockSpec((HID2, action_size), const),          # W3 (unpadded N)
                pl.BlockSpec((1, action_size), const),             # b3
            ],
            out_specs=pl.BlockSpec((tm, action_size), lambda i: (i, 0)),
        ),
        compiler_params=pltpu.CompilerParams(
            dimension_semantics=("parallel",),  # batch tiles shard across TCs on v7x
        ),
    )(x, w1, b1, w2, b2, w3, b3)

    return out[:batch]


def init_dqn_params(key, state_size, action_size):
    """Raw f32 params, weights stored as (in_features, out_features) = torch W.T.
    Mimics PyTorch nn.Linear default init U[-1/sqrt(fan_in), 1/sqrt(fan_in)]."""
    sizes = [(state_size, HID1), (HID1, HID2), (HID2, action_size)]
    params = []
    for i, (fan_in, fan_out) in enumerate(sizes):
        kw, kb = jax.random.split(jax.random.fold_in(key, i))
        bound = 1.0 / jnp.sqrt(jnp.float32(fan_in))
        w = jax.random.uniform(kw, (fan_in, fan_out), jnp.float32, -bound, bound)
        b = jax.random.uniform(kb, (1, fan_out), jnp.float32, -bound, bound)
        params.extend([w, b])
    return tuple(params)


def pack_params(params):
    """bf16 MXU weights (unpadded shapes), f32 biases."""
    w1, b1, w2, b2, w3, b3 = params
    return (w1.astype(jnp.bfloat16), b1,
            w2.astype(jnp.bfloat16), b2,
            w3.astype(jnp.bfloat16), b3)


def dqn_reference(x, params):
    w1, b1, w2, b2, w3, b3 = params
    h1 = jnp.maximum(x @ w1 + b1, 0.0)
    h2 = jnp.maximum(h1 @ w2 + b2, 0.0)
    return h2 @ w3 + b3


if __name__ == "__main__":
    key = jax.random.PRNGKey(0)
    state_size, action_size = 16, 4

    kx, kp, kx2, kx3 = jax.random.split(key, 4)
    params = init_dqn_params(kp, state_size, action_size)
    packed = pack_params(params)

    # Single-tile case with row padding (batch=8 -> tm=16, grid=(1,)).
    x = jax.random.normal(kx, (8, state_size), jnp.float32)
    out = jax.block_until_ready(dqn_forward(x, packed, action_size))
    ref = dqn_reference(x, params)
    assert out.shape == (8, action_size)
    assert jnp.allclose(out, ref, atol=5e-2, rtol=5e-2), "mismatch vs reference (batch=8)"

    # Multi-tile, evenly divisible batch (batch=48, tm=16 -> grid=(3,), no pad).
    x2 = jax.random.normal(kx2, (48, state_size), jnp.float32)
    out2 = jax.block_until_ready(dqn_forward(x2, packed, action_size, tm_max=16))
    ref2 = dqn_reference(x2, params)
    assert out2.shape == (48, action_size)
    assert jnp.allclose(out2, ref2, atol=5e-2, rtol=5e-2), "mismatch vs reference (batch=48)"

    # Multi-tile with a partial last tile handled by row padding
    # (batch=40, tm=16 -> grid=(3,), 8 junk rows sliced off).
    x3 = jax.random.normal(kx3, (40, state_size), jnp.float32)
    out3 = jax.block_until_ready(dqn_forward(x3, packed, action_size, tm_max=16))
    ref3 = dqn_reference(x3, params)
    assert out3.shape == (40, action_size)
    assert jnp.allclose(out3, ref3, atol=5e-2, rtol=5e-2), "mismatch vs reference (batch=40)"

    print("KERNEL_OK")
</pallas_src>

<mosaic_0001>
module attributes {stable_mosaic.version = 11 : i64} {
  func.func @dqn_kernel(%arg0: i32, %arg1: memref<16x16xf32, #tpu.memory_space<vmem>>, %arg2: memref<16x256xbf16, #tpu.memory_space<vmem>>, %arg3: memref<1x256xf32, #tpu.memory_space<vmem>>, %arg4: memref<256x128xbf16, #tpu.memory_space<vmem>>, %arg5: memref<1x128xf32, #tpu.memory_space<vmem>>, %arg6: memref<128x4xbf16, #tpu.memory_space<vmem>>, %arg7: memref<1x4xf32, #tpu.memory_space<vmem>>, %arg8: memref<16x4xf32, #tpu.memory_space<vmem>>) attributes {dimension_semantics = [#tpu.dimension_semantics<parallel>], iteration_bounds = array<i64: 1>, scalar_prefetch = 0 : i64, scratch_operands = 0 : i64, tpu.core_type = #tpu.core_type<tc>, window_params = [{transform_indices = @transform_0, window_bounds = array<i64: 16, 16>}, {pipeline_mode = #tpu.pipeline_mode<synchronous>, transform_indices = @transform_1, window_bounds = array<i64: 16, 256>}, {pipeline_mode = #tpu.pipeline_mode<synchronous>, transform_indices = @transform_2, window_bounds = array<i64: 1, 256>}, {pipeline_mode = #tpu.pipeline_mode<synchronous>, transform_indices = @transform_3, window_bounds = array<i64: 256, 128>}, {pipeline_mode = #tpu.pipeline_mode<synchronous>, transform_indices = @transform_4, window_bounds = array<i64: 1, 128>}, {pipeline_mode = #tpu.pipeline_mode<synchronous>, transform_indices = @transform_5, window_bounds = array<i64: 128, 4>}, {pipeline_mode = #tpu.pipeline_mode<synchronous>, transform_indices = @transform_6, window_bounds = array<i64: 1, 4>}, {transform_indices = @transform_7, window_bounds = array<i64: 16, 4>}]} {
    %c0 = arith.constant 0 : index
    %c0_0 = arith.constant 0 : index
    %0 = vector.load %arg1[%c0, %c0_0] : memref<16x16xf32, #tpu.memory_space<vmem>>, vector<16x16xf32>
    %1 = arith.truncf %0 : vector<16x16xf32> to vector<16x16xbf16>
    %c0_1 = arith.constant 0 : index
    %c0_2 = arith.constant 0 : index
    %2 = vector.load %arg2[%c0_1, %c0_2] : memref<16x256xbf16, #tpu.memory_space<vmem>>, vector<16x256xbf16>
    %cst = arith.constant dense<0.000000e+00> : vector<16x256xf32>
    %3 = tpu.matmul %1, %2, %cst {dimension_numbers = #tpu.dot_dimension_numbers<[1], [0], [0], [1], [0, 0, 1, 1], [], []>} : vector<16x16xbf16>, vector<16x256xbf16>, vector<16x256xf32> -> vector<16x256xf32>
    %c0_3 = arith.constant 0 : index
    %c0_4 = arith.constant 0 : index
    %4 = vector.load %arg3[%c0_3, %c0_4] : memref<1x256xf32, #tpu.memory_space<vmem>>, vector<1x256xf32>
    %5 = vector.broadcast %4 : vector<1x256xf32> to vector<16x256xf32>
    %6 = arith.addf %3, %5 : vector<16x256xf32>
    %cst_5 = arith.constant 0.000000e+00 : f32
    %7 = vector.broadcast %cst_5 : f32 to vector<16x256xf32>
    %8 = arith.maximumf %6, %7 : vector<16x256xf32>
    %9 = arith.truncf %8 : vector<16x256xf32> to vector<16x256xbf16>
    %c0_6 = arith.constant 0 : index
    %c0_7 = arith.constant 0 : index
    %10 = vector.load %arg4[%c0_6, %c0_7] : memref<256x128xbf16, #tpu.memory_space<vmem>>, vector<256x128xbf16>
    %cst_8 = arith.constant dense<0.000000e+00> : vector<16x128xf32>
    %11 = tpu.matmul %9, %10, %cst_8 {dimension_numbers = #tpu.dot_dimension_numbers<[1], [0], [0], [1], [0, 0, 1, 1], [], []>} : vector<16x256xbf16>, vector<256x128xbf16>, vector<16x128xf32> -> vector<16x128xf32>
    %c0_9 = arith.constant 0 : index
    %c0_10 = arith.constant 0 : index
    %12 = vector.load %arg5[%c0_9, %c0_10] : memref<1x128xf32, #tpu.memory_space<vmem>>, vector<1x128xf32>
    %13 = vector.broadcast %12 : vector<1x128xf32> to vector<16x128xf32>
    %14 = arith.addf %11, %13 : vector<16x128xf32>
    %cst_11 = arith.constant 0.000000e+00 : f32
    %15 = vector.broadcast %cst_11 : f32 to vector<16x128xf32>
    %16 = arith.maximumf %14, %15 : vector<16x128xf32>
    %17 = arith.truncf %16 : vector<16x128xf32> to vector<16x128xbf16>
    %c0_12 = arith.constant 0 : index
    %c0_13 = arith.constant 0 : index
    %18 = vector.load %arg6[%c0_12, %c0_13] : memref<128x4xbf16, #tpu.memory_space<vmem>>, vector<128x4xbf16>
    %cst_14 = arith.constant dense<0.000000e+00> : vector<16x4xf32>
    %19 = tpu.matmul %17, %18, %cst_14 {dimension_numbers = #tpu.dot_dimension_numbers<[1], [0], [0], [1], [0, 0, 1, 1], [], []>} : vector<16x128xbf16>, vector<128x4xbf16>, vector<16x4xf32> -> vector<16x4xf32>
    %c0_15 = arith.constant 0 : index
    %c0_16 = arith.constant 0 : index
    %20 = vector.load %arg7[%c0_15, %c0_16] : memref<1x4xf32, #tpu.memory_space<vmem>>, vector<1x4xf32>
    %21 = vector.broadcast %20 : vector<1x4xf32> to vector<16x4xf32>
    %22 = arith.addf %19, %21 : vector<16x4xf32>
    %c0_17 = arith.constant 0 : index
    %c0_18 = arith.constant 0 : index
    %23 = vector.load %arg8[%c0_17, %c0_18] : memref<16x4xf32, #tpu.memory_space<vmem>>, vector<16x4xf32>
    tpu.vector_store %arg8[%c0_17, %c0_18], %22 {strides = array<i32>} : memref<16x4xf32, #tpu.memory_space<vmem>>, vector<16x4xf32>,
    return
  }
  func.func @transform_0(%arg0: i32) -> (i32, i32) {
    %c0_i32 = arith.constant 0 : i32
    %c0_i32_0 = arith.constant 0 : i32
    return %arg0, %c0_i32 : i32, i32
  }
  func.func @transform_1(%arg0: i32) -> (i32, i32) {
    %c0_i32 = arith.constant 0 : i32
    %c0_i32_0 = arith.constant 0 : i32
    %c0_i32_1 = arith.constant 0 : i32
    return %c0_i32, %c0_i32_0 : i32, i32
  }
  func.func @transform_2(%arg0: i32) -> (i32, i32) {
    %c0_i32 = arith.constant 0 : i32
    %c0_i32_0 = arith.constant 0 : i32
    %c0_i32_1 = arith.constant 0 : i32
    return %c0_i32, %c0_i32_0 : i32, i32
  }
  func.func @transform_3(%arg0: i32) -> (i32, i32) {
    %c0_i32 = arith.constant 0 : i32
    %c0_i32_0 = arith.constant 0 : i32
    %c0_i32_1 = arith.constant 0 : i32
    return %c0_i32, %c0_i32_0 : i32, i32
  }
  func.func @transform_4(%arg0: i32) -> (i32, i32) {
    %c0_i32 = arith.constant 0 : i32
    %c0_i32_0 = arith.constant 0 : i32
    %c0_i32_1 = arith.constant 0 : i32
    return %c0_i32, %c0_i32_0 : i32, i32
  }
  func.func @transform_5(%arg0: i32) -> (i32, i32) {
    %c0_i32 = arith.constant 0 : i32
    %c0_i32_0 = arith.constant 0 : i32
    %c0_i32_1 = arith.constant 0 : i32
    return %c0_i32, %c0_i32_0 : i32, i32
  }
  func.func @transform_6(%arg0: i32) -> (i32, i32) {
    %c0_i32 = arith.constant 0 : i32
    %c0_i32_0 = arith.constant 0 : i32
    %c0_i32_1 = arith.constant 0 : i32
    return %c0_i32, %c0_i32_0 : i32, i32
  }
  func.func @transform_7(%arg0: i32) -> (i32, i32) {
    %c0_i32 = arith.constant 0 : i32
    %c0_i32_0 = arith.constant 0 : i32
    return %arg0, %c0_i32 : i32, i32
  }
}

</mosaic_0001>

<bundles_post_ra>
// kernel: tpu_custom_call.1
= control target key start
LH: loop header
LB: loop body
LE: loop exit
PB: predicated region body
PF: predicated region fallthrough
CT: control target
= control target key end

     0   :  { %12 = vsyncpa [#allocation3], 0  ;;  %s557_s24 = smov [#allocation2]   ;;  %s666_s0 = inlined_call_operand.vmem [shape: f32[16,16], index: 0, kind: input, shape index: {}]   ;;  %s667_s1 = inlined_call_operand.vmem [shape: bf16[16,256], index: 1, kind: input, shape index: {}]   ;;  %s668_s2 = inlined_call_operand.vmem [shape: f32[1,256], index: 2, kind: input, shape index: {}]   ;;  %s669_s3 = inlined_call_operand.hbm [shape: bf16[256,128], index: 3, kind: input, shape index: {}]   ;;  %s670_s4 = inlined_call_operand.vmem [shape: f32[1,128], index: 4, kind: input, shape index: {}]   ;;  %s671_s5 = inlined_call_operand.vmem [shape: bf16[128,4], index: 5, kind: input, shape index: {}]   ;;  %s672_s6 = inlined_call_operand.vmem [shape: f32[1,4], index: 6, kind: input, shape index: {}]   ;;  %s673_s7 = inlined_call_operand.vmem [shape: f32[16,4], index: 7, kind: output, shape index: {}]  }
   0x1   :  { %s24_s25 = sshll.u32 %s557_s24, 4  ;;  %s533_s28 = scalar_lea.hbm %s669_s3, 2048  ;;  %s25_s25 = int_to_ptr.vmem [resolvable:$true] %s24_s25 }
   0x2   :  { %p534_p0 = scmp.ne.s32.totalorder %s669_s3, %s533_s28  ;;  %p537_p1 = scmp.lt.u32.totalorder %s533_s28, %s669_s3 }
   0x4   :  { %p539_p2 = pnand %p537_p1, %p534_p0 }
   0x6   :  { %542 = shalt.err (!%p539_p2)
}
   0x7   :  { %s543_s10 = scalar_lea.vmem %s25_s25, 2048  ;;  %p548_p4 = scmp.lt.s32.totalorder %s25_s25, %s25_s25 }
   0x8   :  { %p544_p3 = scmp.ne.s32.totalorder %s25_s25, %s543_s10  ;;  %p549_p5 = scmp.lt.s32.totalorder %s543_s10, %s543_s10 }
   0xa   :  { %p550_p6 = por %p549_p5, %p548_p4 }
   0xc   :  { %p551_p7 = pnand %p550_p6, %p544_p3 }
   0xe   :  { %554 = shalt.err (!%p551_p7)
}
   0xf   :  { %s558_s11 = smov 64   ;;  %s559_s12 = smov 4  }
  0x10   :  { %30 = dma.hbm_to_vmem [thread:$0]  %s669_s3, 2048, %s25_s25, [#allocation3], %s558_s11, %s558_s11, %s559_s12  }
  0x11   :  { %555 = dma.done.wait [#allocation3], 2048  }
  0x12   :  { %556 = vsyncadd [#allocation3], 4294965248  ;;  %v560_v0 = vmov 0   ;;  %v506_v1 = vld [vmem:[%s667_s1 + $0x4] ss:$8 sps:$4 sm:$0xff]   ;;  %vm68_vm0 = vcmask 130048   ;;  %v48_v28 = vlaneseq }
  0x13   :  { %104 = vmatprep.mubr.bf16.mxu0 %v560_v0  ;;  %v508_v2 = vld [vmem:[%s667_s1] ss:$8 sps:$4 sm:$0xff]   ;;  %72 = vmatprep.subr.bf16.mxu0 %v506_v1  ;;  %v513_v10 = vld [vmem:[#allocation2 + $0x50] sm:$0xff]   ;;  %v515_v12 = vld [vmem:[#allocation2 + $0x58] sm:$0xff]   ;;  %v561_v23 = vmov 0.0   ;;  %vm562_vm1 = vmmov 0  }
  0x14   :  { %v41_v3 = vld [vmem:[%s666_s0] sm:$0xff]  ;;  %v42_v4 = vld [vmem:[%s666_s0 + $0x8] sm:$0xff]  ;;  %73 = vmatpush1.bf16.msra.mxu0 %v508_v2  ;;  %v514_v11 = vld [vmem:[#allocation2 + $0x10] sm:$0xff]   ;;  %v49_v29 = vshrl.u32 %v48_v28, 7  ;;  %vm412_vm2 = vcmask 31744  }
  0x15   :  { %v43_v5 = vpack.c.bf16 %v42_v4, %v41_v3  ;;  %v509_v6 = vld [vmem:[#allocation2 + $0x40] sm:$0xff]   ;;  %v511_v8 = vld [vmem:[#allocation2 + $0x48] sm:$0xff]   ;;  %v516_v13 = vld [vmem:[#allocation2 + $0x18] sm:$0xff]   ;;  %480 = vmatprep.subr.bf16.mxu0 %v561_v23 }
  0x16   :  { %v510_v7 = vld [vmem:[#allocation2] sm:$0xff]   ;;  %449 = vmatprep.subr.bf16.mxu1 %v509_v6  ;;  %v512_v9 = vld [vmem:[#allocation2 + $0x8] sm:$0xff]   ;;  %v521_v18 = vld [vmem:[#allocation2 + $0x70] sm:$0xff]   ;;  %v50_v30 = vsub.s32 0, %v49_v29  ;;  %v54_v32 = vsub.s32 1, %v49_v29 }
  0x17   :  { %450 = vmatpush3.bf16.msra.mxu1 %v510_v7  ;;  %422 = vmatmul.mubr.msk.bf16.vlgmr.msra.gmra.mrb[0].mxu0 %vm68_vm0, %v43_v5  ;;  %v517_v14 = vld [vmem:[#allocation2 + $0x60] sm:$0xff]   ;;  %v519_v16 = vld [vmem:[#allocation2 + $0x68] sm:$0xff]   ;;  %v522_v19 = vld [vmem:[#allocation2 + $0x30] sm:$0xff]  }
  0x18   :  { %451 = vmatprep.subr.bf16.mxu1 %v511_v8  ;;  %v518_v15 = vld [vmem:[#allocation2 + $0x20] sm:$0xff]   ;;  %v520_v17 = vld [vmem:[#allocation2 + $0x28] sm:$0xff]   ;;  %v523_v20 = vld [vmem:[#allocation2 + $0x78] sm:$0xff]   ;;  %496 = vmatprep.mubr.msk.bf16.mxu0 %vm562_vm1, %v561_v23 }
  0x19   :  { %v524_v21 = vld [vmem:[#allocation2 + $0x38] sm:$0xff]   ;;  %v525_v22 = vld [vmem:[%s671_s5] sm:$0xff]   ;;  %v526_v24 = vld [vmem:[%s671_s5 + $0x8] sm:$0xff]  }
  0x1a   :  { %481 = vmatpush3.bf16.msra.mxu0 %v525_v22  ;;  %v527_v25 = vld [vmem:[%s671_s5 + $0x10] sm:$0xff]   ;;  %v528_v26 = vld [vmem:[%s671_s5 + $0x18] sm:$0xff]   ;;  %v529_v27 = vld [vmem:[%s671_s5 + $0x20] sm:$0xff]  }
  0x1b   :  { %452 = vmatpush3.bf16.msra.mxu1 %v512_v9  ;;  %482 = vmatprep.subr.bf16.mxu0 %v561_v23  ;;  %v46_v31 = vld [vmem:[%s668_s2] sm:$0x3]  ;;  %v530_v49 = vld [vmem:[%s671_s5 + $0x28] sm:$0xff]   ;;  %v531_v50 = vld [vmem:[%s671_s5 + $0x30] sm:$0xff]  }
  0x1c   :  { %453 = vmatprep.subr.bf16.mxu1 %v513_v10  ;;  %v51_v33 = vrot.slane %v46_v31, %v50_v30  ;;  %v55_v34 = vrot.slane %v46_v31, %v54_v32  ;;  %v532_v51 = vld [vmem:[%s671_s5 + $0x38] sm:$0xff]   ;;  %v423_v53 = vld [vmem:[%s670_s4] ss:$0 sm:$0xff] }
  0x1d   :  { %v440_v0 = vld [vmem:[%s672_s6] ss:$0 sm:$0xff] }
  0x1e   :  { %483 = vmatpush3.bf16.msra.mxu0 %v526_v24 }
  0x1f   :  { %454 = vmatpush3.bf16.msra.mxu1 %v514_v11  ;;  %484 = vmatprep.subr.bf16.mxu0 %v561_v23 }
  0x20   :  { %455 = vmatprep.subr.bf16.mxu1 %v515_v12 }
  0x22   :  { %485 = vmatpush3.bf16.msra.mxu0 %v527_v25 }
  0x23   :  { %456 = vmatpush3.bf16.msra.mxu1 %v516_v13  ;;  %486 = vmatprep.subr.bf16.mxu0 %v561_v23 }
  0x24   :  { %457 = vmatprep.subr.bf16.mxu1 %v517_v14 }
  0x26   :  { %487 = vmatpush3.bf16.msra.mxu0 %v528_v26 }
  0x27   :  { %458 = vmatpush3.bf16.msra.mxu1 %v518_v15  ;;  %488 = vmatprep.subr.bf16.mxu0 %v561_v23 }
  0x28   :  { %459 = vmatprep.subr.bf16.mxu1 %v519_v16 }
  0x2a   :  { %489 = vmatpush3.bf16.msra.mxu0 %v529_v27 }
  0x2b   :  { %460 = vmatpush3.bf16.msra.mxu1 %v520_v17  ;;  %490 = vmatprep.subr.bf16.mxu0 %v561_v23 }
  0x2c   :  { %461 = vmatprep.subr.bf16.mxu1 %v521_v18 }
  0x2e   :  { %491 = vmatpush3.bf16.msra.mxu0 %v530_v49 }
  0x2f   :  { %462 = vmatpush3.bf16.msra.mxu1 %v522_v19  ;;  %492 = vmatprep.subr.bf16.mxu0 %v561_v23 }
  0x30   :  { %463 = vmatprep.subr.bf16.mxu1 %v523_v20 }
  0x32   :  { %493 = vmatpush3.bf16.msra.mxu0 %v531_v50 }
  0x33   :  { %464 = vmatpush3.bf16.msra.mxu1 %v524_v21  ;;  %494 = vmatprep.subr.bf16.mxu0 %v561_v23 }
  0x36   :  { %495 = vmatpush3.bf16.msra.mxu0 %v532_v51 }
  0xea   :  { %v106_v35 = vpop.f32.mrb[0].mxu0 }
  0xeb   :  { %v107_v36 = vadd.f32 %v106_v35, %v51_v33  ;;  %v108_v37 = vpop.f32.mrb[1].mxu0 }
  0xec   :  { %v109_v38 = vadd.f32 %v108_v37, %v55_v34  ;;  %v110_v39 = vpop.f32.mrb[2].mxu0 }
  0xed   :  { %v111_v40 = vadd.f32 %v110_v39, %v51_v33  ;;  %v112_v41 = vpop.f32.mrb[3].mxu0  ;;  %v115_v43 = vmax.f32 %v107_v36, 0.0 }
  0xee   :  { %v113_v42 = vadd.f32 %v112_v41, %v55_v34  ;;  %v116_v45 = vmax.f32 %v109_v38, 0.0 }
  0xef   :  { %v117_v44 = vmax.f32 %v111_v40, 0.0 }
  0xf0   :  { %v118_v46 = vmax.f32 %v113_v42, 0.0 }
  0xf1   :  { %v119_v47 = vpack.c.bf16 %v117_v44, %v115_v43 }
  0xf2   :  { %v120_v48 = vpack.c.bf16 %v118_v46, %v116_v45 }
  0xf4   :  { %288 = vmatprep.mubr.bf16.mxu1 %v120_v48 }
  0xf5   :  { %289 = vmatmul.mubr.bf16.vlgmr.msra.gmra.mrb[0].mxu1 %v119_v47 }
 0x1c8   :  { %v465_v52 = vpop.f32.mrb[0].mxu1 }
 0x1c9   :  { %v466_v54 = vpop.f32.mrb[1].mxu1 }
 0x1ca   :  { %v467_v55 = vadd.f32 %v466_v54, %v465_v52  ;;  %v468_v56 = vpop.f32.mrb[2].mxu1 }
 0x1cb   :  { %v469_v57 = vpop.f32.mrb[3].mxu1 }
 0x1cc   :  { %v291_v58 = vadd.f32 %v467_v55, %v423_v53  ;;  %v470_v59 = vadd.f32 %v469_v57, %v468_v56 }
 0x1ce   :  { %v294_v60 = vadd.f32 %v470_v59, %v423_v53  ;;  %v297_v61 = vmax.f32 %v291_v58, 0.0 }
 0x1d0   :  { %v298_v62 = vmax.f32 %v294_v60, 0.0 }
 0x1d2   :  { %v299_v63 = vpack.c.bf16 %v298_v62, %v297_v61 }
 0x1d4   :  { %497 = vmatmul.mubr.bf16.vlgmr.msra.gmra.mrb[4].mxu0 %v299_v63 }
 0x2a7   :  { %v405_v1 = vpop.f32.mrb[4].mxu0 }
 0x2a8   :  { %v406_v2 = vadd.f32 %v440_v0, %v405_v1  ;;  %v498_v3 = vpop.f32.mrb[5].mxu0 }
 0x2a9   :  { %v408_v4 = vpop.f32.mrb[6].mxu0 }
 0x2aa   :  { %413 = vst.msk [vmem:[%s673_s7] sm:$0xff] %vm412_vm2, %v406_v2  ;;  %v409_v5 = vadd.f32 %v440_v0, %v408_v4  ;;  %v499_v6 = vpop.f32.mrb[7].mxu0 }
 0x2ac   :  { %414 = vst.msk [vmem:[%s673_s7 + $0x8] sm:$0xff] %vm412_vm2, %v409_v5 }
 0x2ad   :  { %419 = vsyncpa [#allocation3], 1 }

</bundles_post_ra>
